<compile_context>
chip_gen: v6e
topology: v6e:2x2x1
jax: 0.10.0
libtpu: 0.0.40
codegen_flags: <defaults>
</compile_context>

<pallas_src>
import functools
import math

import jax
import jax.numpy as jnp
from jax import lax
from jax.experimental import pallas as pl
from jax.experimental.pallas import tpu as pltpu


def _round_up(x, m):
    return (x + m - 1) // m * m


@functools.lru_cache(maxsize=None)
def _roll_matches_jnp():
    """One-off probe: does pltpu.roll follow jnp.roll index semantics here?

    Guards the conv-tap extraction against a sign flip in the lane-rotate
    lowering; costs one tiny (8,128) kernel at wrapper-build time.
    """
    def k(x_ref, o_ref):
        o_ref[...] = pltpu.roll(x_ref[...], 1, 1)

    x = jnp.arange(8 * 128, dtype=jnp.float32).reshape(8, 128)
    out = pl.pallas_call(
        k, out_shape=jax.ShapeDtypeStruct((8, 128), jnp.float32))(x)
    return bool(jnp.array_equal(out, jnp.roll(x, 1, axis=1)))


def _vmem_capacity_bytes():
    """Physical VMEM per TensorCore (128 MiB v5e/v6e, 64 MiB v7x)."""
    try:
        info = pltpu.get_tpu_info()
        for name in ("vmem_capacity_bytes", "vmem_bytes", "vmem_size_bytes"):
            v = getattr(info, name, None)
            if v:
                return int(v)
    except Exception:
        pass
    return 64 * 1024 * 1024   # conservative default = v7x per-core VMEM


def _make_attention_map_fn(W, K, L, Lp, roll_like_jnp):
    """Returns attn(mx_map, avg_map, col, w_ref) -> (NB, Lp) f32 sigmoid map.

    mx_map / avg_map : (NB, Lp) f32 channel-max / channel-mean maps (flattened
                       H*W on the lane axis; the Lp-L pad lanes are zero).
    col              : (1, Lp) int32 column index of each flattened position.
    w_ref            : (2, K*K) f32 SMEM ref; row 0 = max branch, row 1 = avg
                       (matches torch.cat((max_x, avg_x), dim=1)).

    Implements Conv2d(2, 1, K, padding=K//2, bias=False) (cross-correlation,
    zero padding) + sigmoid directly in the flattened domain.  Each tap is a
    pltpu.roll of the maps (XLU) plus an iota/column validity mask, so no
    unaligned slices or padded copies are ever materialized.
    """
    P = (K - 1) // 2

    def attention_map(mx_map, avg_map, col, w_ref):
        lane = lax.broadcasted_iota(jnp.int32, (1, Lp), 1)
        acc = jnp.zeros(mx_map.shape, jnp.float32)
        for kx in range(K):
            ox = kx - P
            # Horizontal validity (shared by every ky): 0 <= col + ox < W.
            if ox > 0:
                hmask = col < (W - ox)
            elif ox < 0:
                hmask = col >= (-ox)
            else:
                hmask = None
            for ky in range(K):
                oy = ky - P
                d = oy * W + ox                    # flattened source offset
                # Vertical / roll-wrap validity: 0 <= lane + d < L.
                if d > 0:
                    vmask = lane < (L - d)
                elif d < 0:
                    vmask = lane >= (-d)
                else:
                    vmask = None
                if hmask is None:
                    valid = vmask
                elif vmask is None:
                    valid = hmask
                else:
                    valid = hmask & vmask

                shift = ((-d) if roll_like_jnp else d) % Lp
                if shift == 0:
                    r_mx, r_avg = mx_map, avg_map
                else:
                    r_mx = pltpu.roll(mx_map, shift, 1)
                    r_avg = pltpu.roll(avg_map, shift, 1)

                t = ky * K + kx
                contrib = w_ref[0, t] * r_mx + w_ref[1, t] * r_avg
                if valid is not None:
                    contrib = jnp.where(valid, contrib, 0.0)
                acc = acc + contrib
        return jax.nn.sigmoid(acc)                  # (NB, Lp)

    return attention_map


def _make_fused(N, NB, C, L, Lp, W, K, dtype, roll_like_jnp, vmem_limit):
    attn = _make_attention_map_fn(W, K, L, Lp, roll_like_jnp)
    grid_n = N // NB

    def kernel(w_ref, col_ref, x_ref, o_ref):
        x = x_ref[...]                                       # (NB, C, Lp)
        # Channel reductions (axis=1 = sublane axis of each NB slab); mean
        # accumulates in f32, max reduces in the input dtype then casts.
        avg = jnp.mean(x, axis=1, dtype=jnp.float32)         # (NB, Lp)
        mx = jnp.max(x, axis=1).astype(jnp.float32)          # (NB, Lp)
        v = attn(mx, avg, col_ref[...], w_ref)               # (NB, Lp) f32
        # Multiply in the storage dtype (bf16 stays bf16 -> half the HBM
        # traffic, which is the real bound; v5e expands bf16 VPU ops itself).
        o_ref[...] = (x * v[:, None, :].astype(x.dtype)).astype(o_ref.dtype)

    def call(x3, col, w_flat):
        return pl.pallas_call(
            kernel,
            out_shape=jax.ShapeDtypeStruct((N, C, Lp), dtype),
            grid=(grid_n,),
            in_specs=[
                pl.BlockSpec(memory_space=pltpu.MemorySpace.SMEM),
                pl.BlockSpec((1, Lp), lambda n: (0, 0)),
                pl.BlockSpec((NB, C, Lp), lambda n: (n, 0, 0)),
            ],
            out_specs=pl.BlockSpec((NB, C, Lp), lambda n: (n, 0, 0)),
            compiler_params=pltpu.CompilerParams(
                dimension_semantics=("parallel",),
                vmem_limit_bytes=vmem_limit),
        )(w_flat, col, x3)

    return call


def _make_split(N, C, Cp, ct, L, Lp, W, K, dtype, roll_like_jnp, vmem_limit):
    assert Cp % ct == 0
    nct = Cp // ct
    attn = _make_attention_map_fn(W, K, L, Lp, roll_like_jnp)
    need_c_mask = Cp != C

    def reduce_kernel(w_ref, col_ref, x_ref, v_ref, sum_acc, max_acc):
        c = pl.program_id(1)

        @pl.when(c == 0)
        def _():
            sum_acc[...] = jnp.zeros((1, Lp), jnp.float32)
            max_acc[...] = jnp.full((1, Lp), -jnp.inf, jnp.float32)

        xb = x_ref[0]                                        # (ct, Lp)
        # TODO(synk): if a bundle dump ever shows VALU/XLU saturating here,
        # the channel sum could ride the idle MXU (ones(1,ct) @ xb) instead.
        sum_acc[...] += jnp.sum(xb, axis=0, keepdims=True, dtype=jnp.float32)
        if need_c_mask:
            # Channels were zero-padded to a multiple of ct; keep pad rows out
            # of the max (they would win over all-negative activations).
            row = lax.broadcasted_iota(jnp.int32, (ct, 1), 0) + c * ct
            xb_m = jnp.where(row < C, xb, -jnp.inf)
        else:
            xb_m = xb
        max_acc[...] = jnp.maximum(
            max_acc[...],
            jnp.max(xb_m, axis=0, keepdims=True).astype(jnp.float32))

        @pl.when(c == nct - 1)
        def _():
            avg = sum_acc[...] * (1.0 / C)                   # divide by true C
            v_ref[0] = attn(max_acc[...], avg, col_ref[...], w_ref)

    def mul_kernel(x_ref, v_ref, o_ref):
        x = x_ref[0]                                         # (ct, Lp)
        v = v_ref[0]                                         # (1, Lp) f32
        o_ref[0] = (x * v.astype(x.dtype)).astype(o_ref.dtype)

    def call(x3, col, w_flat):
        v = pl.pallas_call(
            reduce_kernel,
            out_shape=jax.ShapeDtypeStruct((N, 1, Lp), jnp.float32),
            grid=(N, nct),
            in_specs=[
                pl.BlockSpec(memory_space=pltpu.MemorySpace.SMEM),
                pl.BlockSpec((1, Lp), lambda n, c: (0, 0)),
                pl.BlockSpec((1, ct, Lp), lambda n, c: (n, c, 0)),
            ],
            out_specs=pl.BlockSpec((1, 1, Lp), lambda n, c: (n, 0, 0)),
            scratch_shapes=[pltpu.VMEM((1, Lp), jnp.float32),
                            pltpu.VMEM((1, Lp), jnp.float32)],
            compiler_params=pltpu.CompilerParams(
                dimension_semantics=("parallel", "arbitrary"),
                vmem_limit_bytes=vmem_limit),
        )(w_flat, col, x3)

        # Streaming broadcast-multiply; both axes parallel (megacore).  Default
        # double-buffering hides DMA at the >=2 MiB blocks picked below.
        return pl.pallas_call(
            mul_kernel,
            out_shape=jax.ShapeDtypeStruct((N, Cp, Lp), dtype),
            grid=(N, nct),
            in_specs=[
                pl.BlockSpec((1, ct, Lp), lambda n, c: (n, c, 0)),
                pl.BlockSpec((1, 1, Lp), lambda n, c: (n, 0, 0)),
            ],
            out_specs=pl.BlockSpec((1, ct, Lp), lambda n, c: (n, c, 0)),
            compiler_params=pltpu.CompilerParams(
                dimension_semantics=("parallel", "parallel"),
                vmem_limit_bytes=vmem_limit),
        )(x3, v)

    return call


def _pick_c_tile(C, Lp, itemsize, target_block_bytes):
    """Pick (c_tile, C_padded) for the split path."""
    max_rows = max(8, target_block_bytes // (Lp * itemsize))
    if C <= max_rows:
        return C, C
    for ct in range(int(max_rows), 7, -1):
        if ct % 8 == 0 and C % ct == 0:
            return ct, C
    # Pathological C (no multiple-of-8 divisor under the budget): pad the
    # channel axis; pad rows are masked out of the max inside the kernel.
    ct = max(8, (int(max_rows) // 8) * 8)
    return ct, _round_up(C, ct)


def make_cbam_spatial(N, C, H, W, K, dtype=jnp.float32, *,
                      force_split=False, c_tile=None):
    assert K in (3, 5, 7), "kernel size must be 3, 5 or 7"
    L = H * W
    Lp = _round_up(L, 128)            # lane-dense, unmasked loads/stores
    itemsize = jnp.dtype(dtype).itemsize

    # Generation-aware VMEM budgeting: 128 MiB physical on v5e/v6e, 64 MiB on
    # v7x.  Raise the scoped limit (defaults 16-32 MiB) and keep the fused
    # path (2 HBM passes vs 3 for split) as long as the double-buffered
    # in+out blocks fit, with headroom for conv temporaries and the v map.
    cap = _vmem_capacity_bytes()
    vmem_limit = int(min(64 * 1024 * 1024, cap * 3 // 4))
    fused_budget = vmem_limit - 8 * 1024 * 1024
    split_target = (4 if cap >= 96 * 1024 * 1024 else 2) * 1024 * 1024

    roll_like_jnp = _roll_matches_jnp()

    # Batch NB elements per fused grid step: amortizes per-step overhead and
    # fills sublanes in the KxK conv, while keeping >=2 grid steps when N >= 2
    # so both v7x TensorCores get work.
    def fused_bytes(nb):              # 2x (in + out) pipelined blocks
        return 4 * nb * C * Lp * itemsize

    nb_best = 0
    for cand in range(1, N + 1):
        if N % cand:
            continue
        if N >= 2 and N // cand < 2:
            continue
        if fused_bytes(cand) > fused_budget:
            continue
        nb_best = cand

    use_split = force_split or nb_best == 0

    if use_split:
        if c_tile is not None:
            ct, Cp = c_tile, _round_up(C, c_tile)
        else:
            ct, Cp = _pick_c_tile(C, Lp, itemsize, split_target)
        impl = _make_split(N, C, Cp, ct, L, Lp, W, K, dtype,
                           roll_like_jnp, vmem_limit)
    else:
        Cp = C
        impl = _make_fused(N, nb_best, C, L, Lp, W, K, dtype,
                           roll_like_jnp, vmem_limit)

    col = (jnp.arange(Lp, dtype=jnp.int32) % W).reshape(1, Lp)

    def forward(x, w):
        # x: (N, C, H, W); w: (1, 2, K, K) conv weight (bias=False).
        x3 = x.reshape(N, C, L)
        if Cp != C or Lp != L:
            x3 = jnp.pad(x3, ((0, 0), (0, Cp - C), (0, Lp - L)))
        w_flat = w.reshape(2, K * K).astype(jnp.float32)
        y = impl(x3, col, w_flat)
        return y[:, :C, :L].reshape(N, C, H, W)

    return forward


def reference(x, w, K):
    """Pure-JAX reference mirroring the PyTorch forward."""
    P = (K - 1) // 2
    avg = jnp.mean(x, axis=1, keepdims=True)
    mx = jnp.max(x, axis=1, keepdims=True)
    inp = jnp.concatenate([mx, avg], axis=1)
    v = lax.conv_general_dilated(
        inp, w, window_strides=(1, 1), padding=((P, P), (P, P)),
        dimension_numbers=("NCHW", "OIHW", "NCHW"),
        precision=lax.Precision.HIGHEST)
    return x * jax.nn.sigmoid(v)


if __name__ == "__main__":
    key = jax.random.PRNGKey(0)

    def run_case(N, C, H, W, K, *, force_split=False, c_tile=None, seed=0):
        kx, kw = jax.random.split(jax.random.fold_in(key, seed))
        x = jax.random.normal(kx, (N, C, H, W), dtype=jnp.float32)
        bound = 1.0 / math.sqrt(2 * K * K)    # PyTorch kaiming-uniform bound
        w = jax.random.uniform(kw, (1, 2, K, K), jnp.float32, -bound, bound)
        fwd = make_cbam_spatial(N, C, H, W, K,
                                force_split=force_split, c_tile=c_tile)
        out = jax.block_until_ready(fwd(x, w))
        ref = reference(x, w, K)
        assert out.shape == (N, C, H, W)
        assert jnp.allclose(out, ref, atol=1e-4, rtol=1e-4), (
            f"mismatch N={N} C={C} H={H} W={W} K={K} split={force_split}")

    # Fused path (lane-dense, batched grid steps) and forced split path
    # (C-tiled reduce -> streaming multiply) on the aligned demo shape.
    run_case(2, 16, 16, 16, 7)
    run_case(2, 16, 16, 16, 7, force_split=True, c_tile=8)

    # Ragged spatial size (14*14=196 -> padded to 256 lanes), NB=2 batching,
    # K=3, and a C that exercises channel padding on the split path.
    run_case(4, 12, 14, 14, 3, seed=1)
    run_case(4, 12, 14, 14, 3, force_split=True, c_tile=8, seed=1)

    print("KERNEL_OK")
</pallas_src>

<mosaic_0001>
module attributes {stable_mosaic.version = 11 : i64} {
  func.func @k(%arg0: memref<8x128xf32, #tpu.memory_space<vmem>>, %arg1: memref<8x128xf32, #tpu.memory_space<vmem>>) attributes {dimension_semantics = [], scalar_prefetch = 0 : i64, scratch_operands = 0 : i64, tpu.core_type = #tpu.core_type<tc>} {
    %c0 = arith.constant 0 : index
    %c0_0 = arith.constant 0 : index
    %0 = vector.load %arg0[%c0, %c0_0] : memref<8x128xf32, #tpu.memory_space<vmem>>, vector<8x128xf32>
    %c1_i32 = arith.constant 1 : i32
    %1 = tpu.dynamic_rotate %0 by %c1_i32 dim 1 : vector<8x128xf32>, i32 -> vector<8x128xf32>
    %c0_1 = arith.constant 0 : index
    %c0_2 = arith.constant 0 : index
    %2 = vector.load %arg1[%c0_1, %c0_2] : memref<8x128xf32, #tpu.memory_space<vmem>>, vector<8x128xf32>
    tpu.vector_store %arg1[%c0_1, %c0_2], %1 {strides = array<i32>} : memref<8x128xf32, #tpu.memory_space<vmem>>, vector<8x128xf32>,
    return
  }
}

</mosaic_0001>

<bundles_post_ra>
// kernel: tpu_custom_call.1
= control target key start
LH: loop header
LB: loop body
LE: loop exit
PB: predicated region body
PF: predicated region fallthrough
CT: control target
= control target key end

     0   :  { %6 = vsyncpa [#allocation3], 0  ;;  %s106_s0 = inlined_call_operand.hbm [shape: f32[8,128], index: 0, kind: input, shape index: {}]   ;;  %s107_s1 = inlined_call_operand.hbm [shape: f32[8,128], index: 1, kind: output, shape index: {}]  }
   0x1   :  { %7 = vsyncpa [#allocation4], 0  ;;  %s87_s6 = smov [#allocation2]  }
   0x2   :  { %s14_s7 = sshll.u32 %s87_s6, 4  ;;  %s15_s7 = int_to_ptr.vmem [resolvable:$true] %s14_s7 }
   0x3   :  { %s51_s8 = scalar_lea.vmem %s15_s7, 128  ;;  %p56_p1 = scmp.lt.s32.totalorder %s15_s7, %s15_s7 }
   0x4   :  { %p52_p0 = scmp.ne.s32.totalorder %s15_s7, %s51_s8  ;;  %p57_p2 = scmp.lt.s32.totalorder %s51_s8, %s51_s8 }
   0x6   :  { %p58_p3 = por %p57_p2, %p56_p1 }
   0x8   :  { %p59_p4 = pnand %p58_p3, %p52_p0 }
   0xa   :  { %62 = shalt.err (!%p59_p4)
}
   0xb   :  { %17 = dma.hbm_to_vmem [thread:$0]  %s106_s0, 128, %s15_s7, [#allocation3]  }
   0xc   :  { %83 = dma.done.wait [#allocation3], 128  }
   0xd   :  { %84 = vsyncadd [#allocation3], 4294967168  ;;  %v21_v0 = vld [vmem:[#allocation2] sm:$0xff]  ;;  %s88_s11 = smov 1   ;;  %s89_s12 = smov [#allocation5]  }
   0xe   :  { %22 = vrot.lane.b32.xlu0 %v21_v0, %s88_s11  ;;  %s31_s13 = sshll.u32 %s89_s12, 4  ;;  %s32_s13 = int_to_ptr.vmem [resolvable:$true] %s31_s13 }
   0xf   :  { %s63_s14 = scalar_lea.vmem %s32_s13, 128  ;;  %p68_p6 = scmp.lt.s32.totalorder %s32_s13, %s32_s13 }
  0x10   :  { %p64_p5 = scmp.ne.s32.totalorder %s32_s13, %s63_s14  ;;  %p69_p7 = scmp.lt.s32.totalorder %s63_s14, %s63_s14 }
  0x12   :  { %p70_p8 = por %p69_p7, %p68_p6 }
  0x14   :  { %p71_p9 = pnand %p70_p8, %p64_p5 }
  0x80   :  { %v23_v1 = vpop.permute.xlu0 %22 }
  0x81   :  { %24 = vst [vmem:[#allocation5] sm:$0xff] %v23_v1 }
  0x82   :  { %74 = shalt.err (!%p71_p9)
}
  0x83   :  { %34 = dma.vmem_to_hbm [thread:$0]  %s32_s13, 128, %s107_s1, [#allocation4]  }
  0x84   :  { %85 = dma.done.wait [#allocation4], 128  }
  0x85   :  { %86 = vsyncadd [#allocation4], 4294967168 }
  0x86   :  { %38 = vsyncpa [#allocation3], 1 }
  0x87   :  { %39 = vsyncpa [#allocation4], 1 }

</bundles_post_ra>
